<compile_context>
chip_gen: v6e
topology: v6e:2x2x1
jax: 0.10.0
libtpu: 0.0.40
codegen_flags: <defaults>
</compile_context>

<pallas_src>
import functools

import jax
import jax.numpy as jnp
from jax.experimental import pallas as pl
from jax.experimental.pallas import tpu as pltpu


def se_kernel(x_ref, w1t_ref, b1_ref, w2t_ref, b2_ref, o_ref, *, inv_hw):
    # --- Squeeze: global average pool over the spatial (lane) axis. ---
    # Single-use f32 upcast feeding the reduce: no full-block f32 copy is kept
    # live across the kernel (would double VMEM pressure / spill at big blocks).
    mean = jnp.sum(x_ref[...].astype(jnp.float32), axis=2) * inv_hw      # (NB, C)

    # --- Excite: two 1x1 convs == tiny channel contractions, batched over NB. ---
    h = jnp.dot(mean, w1t_ref[...], preferred_element_type=jnp.float32)  # (NB, Cr)
    h = jnp.maximum(h + b1_ref[...], 0.0)                                # ReLU
    s = jnp.dot(h, w2t_ref[...], preferred_element_type=jnp.float32)     # (NB, C)
    s = s + b2_ref[...]
    s = jnp.clip(s + 3.0, 0.0, 6.0) * (1.0 / 6.0)                        # hard-sigmoid

    # --- Scale identity. ---
    # Re-index x_ref (fresh streamed load) and multiply in the storage dtype:
    # bf16 inputs stay bf16 on the store path; only the tiny (NB, C, 1) scale
    # is cast (after its relayout, which is done in f32).
    s3 = s[:, :, None]                                                   # (NB, C, 1)
    o_ref[...] = x_ref[...] * s3.astype(o_ref.dtype)


def _vmem_plan(param_bytes):
    """Pick (vmem_limit_bytes, per-block byte budget) for the current chip."""
    phys = 64 << 20  # conservative default = v7x per-TensorCore VMEM
    try:
        info = pltpu.get_tpu_info()
        for name in ("vmem_capacity_bytes", "vmem_bytes", "vmem_size_bytes"):
            v = getattr(info, name, None)
            if v:
                phys = int(v)
                break
    except Exception:
        pass
    if phys >= (100 << 20):          # v5e / v6e: 128 MiB physical VMEM
        vmem_limit = 72 << 20
        block_cap = 14 << 20
    else:                            # v7x: 64 MiB per TensorCore
        vmem_limit = 48 << 20
        block_cap = 10 << 20
    # x and out blocks are each double-buffered by the pipeline -> 4 resident
    # streaming buffers, plus the (double-buffered) params and some headroom.
    budget = (vmem_limit - 2 * param_bytes - (4 << 20)) // 4
    return vmem_limit, max(1 << 20, min(block_cap, budget))


def se_module(x_nchw, w1, b1, w2, b2, *, nb=None, donate_input=False):
    """SE forward. x: (N,C,H,W); w1: (Cr,C); b1: (Cr,); w2: (C,Cr); b2: (C,)."""
    n, c, h, w = x_nchw.shape
    cr = w1.shape[0]
    hw = h * w
    itemsize = x_nchw.dtype.itemsize

    # x stays unpadded in HBM; spatial sits on the lane axis.
    x_flat = x_nchw.reshape(n, c, hw)

    param_bytes = 4 * (2 * c * cr + c + cr)
    vmem_limit, block_budget = _vmem_plan(param_bytes)

    if nb is None:
        bytes_per_batch = max(1, c * hw * itemsize)
        nb = max(1, min(n, block_budget // bytes_per_batch))
        if n >= 2:
            nb = min(nb, n // 2)          # keep >=2 grid steps for dual-TC chips
        while n % nb:
            nb -= 1
        # Prefer an even number of grid steps so v7x's two TensorCores split
        # the "parallel" axis evenly (an odd 3-step grid idles one core 1/3).
        steps = n // nb
        if steps % 2 == 1 and steps != n:
            for cand in range(nb - 1, 0, -1):
                if n % cand == 0 and (n // cand) % 2 == 0:
                    nb = cand
                    break
    else:
        nb = max(1, min(nb, n))
        while n % nb:
            nb -= 1
    # TODO(synk): if a single (1, C, HW) block exceeds the VMEM block budget
    # (very large early-stage feature maps), add an inner "arbitrary" grid axis
    # over HW with a two-pass sum-then-scale scheme instead of one huge block.

    # Tiny parameters: f32 compute, pre-transposed / pre-shaped in the wrapper.
    w1t = w1.astype(jnp.float32).T                 # (C, Cr)
    w2t = w2.astype(jnp.float32).T                 # (Cr, C)
    b1_2d = b1.astype(jnp.float32).reshape(1, cr)  # broadcasts over NB
    b2_2d = b2.astype(jnp.float32).reshape(1, c)

    grid = (n // nb,)
    kernel = functools.partial(se_kernel, inv_hw=1.0 / hw)

    cost = pl.CostEstimate(
        flops=2 * n * c * hw + 4 * n * c * cr,
        transcendentals=0,
        bytes_accessed=2 * n * c * hw * itemsize + param_bytes,
    )

    out_flat = pl.pallas_call(
        kernel,
        out_shape=jax.ShapeDtypeStruct((n, c, hw), x_nchw.dtype),
        grid_spec=pltpu.PrefetchScalarGridSpec(
            num_scalar_prefetch=0,
            grid=grid,
            in_specs=[
                pl.BlockSpec((nb, c, hw), lambda i: (i, 0, 0)),  # x block
                pl.BlockSpec((c, cr), lambda i: (0, 0)),         # w1^T (resident)
                pl.BlockSpec((1, cr), lambda i: (0, 0)),         # b1
                pl.BlockSpec((cr, c), lambda i: (0, 0)),         # w2^T
                pl.BlockSpec((1, c), lambda i: (0, 0)),          # b2
            ],
            out_specs=pl.BlockSpec((nb, c, hw), lambda i: (i, 0, 0)),
        ),
        compiler_params=pltpu.CompilerParams(
            dimension_semantics=("parallel",),
            vmem_limit_bytes=int(vmem_limit),
        ),
        cost_estimate=cost,
        # Aliasing x -> out halves the HBM footprint (each output block is
        # written exactly once, after its input block was consumed in the same
        # grid step).  Enable only when the caller can actually donate x's
        # buffer; otherwise XLA inserts a defensive copy (an extra HBM pass).
        input_output_aliases=({0: 0} if donate_input else {}),
    )(x_flat, w1t, b1_2d, w2t, b2_2d)

    return out_flat.reshape(n, c, h, w)


def se_reference(x, w1, b1, w2, b2):
    # Plain-JAX reference (f32 math) for the correctness check.
    xf = x.astype(jnp.float32)
    mean = jnp.mean(xf, axis=(2, 3), keepdims=True)                       # (N,C,1,1)
    h = jnp.einsum("oc,ncij->noij", w1, mean) + b1[None, :, None, None]
    h = jnp.maximum(h, 0.0)
    s = jnp.einsum("oc,ncij->noij", w2, h) + b2[None, :, None, None]
    s = jnp.clip(s + 3.0, 0.0, 6.0) / 6.0
    return xf * s


if __name__ == "__main__":
    key = jax.random.PRNGKey(0)
    N, C, H, W = 2, 8, 16, 16
    reduction = 4
    Cr = C // reduction

    k_x, k_w1, k_b1, k_w2, k_b2 = jax.random.split(key, 5)
    x = jax.random.normal(k_x, (N, C, H, W), dtype=jnp.float32)
    # Deterministic synthetic parameters (Conv2d 1x1 weights squeezed to 2D).
    w1 = jax.random.normal(k_w1, (Cr, C), dtype=jnp.float32) * 0.1
    b1 = jax.random.normal(k_b1, (Cr,), dtype=jnp.float32) * 0.1
    w2 = jax.random.normal(k_w2, (C, Cr), dtype=jnp.float32) * 0.1
    b2 = jax.random.normal(k_b2, (C,), dtype=jnp.float32) * 0.1

    se_fn = jax.jit(se_module)

    # 1) f32 storage path.
    ref = se_reference(x, w1, b1, w2, b2)
    out = jax.block_until_ready(se_fn(x, w1, b1, w2, b2))
    assert out.shape == (N, C, H, W) and out.dtype == jnp.float32
    assert jnp.allclose(out, ref, atol=1e-4, rtol=1e-4), (
        float(jnp.max(jnp.abs(out - ref))))

    # 2) bf16 storage path: bf16 stays bf16 in HBM and on the scale-multiply.
    x_bf16 = x.astype(jnp.bfloat16)
    ref_bf = se_reference(x_bf16, w1, b1, w2, b2)
    out_bf = jax.block_until_ready(se_fn(x_bf16, w1, b1, w2, b2))
    assert out_bf.dtype == jnp.bfloat16
    assert jnp.allclose(out_bf.astype(jnp.float32), ref_bf, atol=5e-2, rtol=5e-2), (
        float(jnp.max(jnp.abs(out_bf.astype(jnp.float32) - ref_bf))))

    # 3) Ragged spatial size (7x7 = 49 lanes, not a multiple of 128 -> masked
    #    store group, no wrapper pad/slice) with NB batching (N=4 -> 2 parallel
    #    grid steps), exercising the aliased-output path.
    N2, C2, H2, W2 = 4, 16, 7, 7
    Cr2 = C2 // reduction
    k2 = jax.random.split(jax.random.PRNGKey(1), 5)
    x2 = jax.random.normal(k2[0], (N2, C2, H2, W2), dtype=jnp.float32)
    w1b = jax.random.normal(k2[1], (Cr2, C2), dtype=jnp.float32) * 0.1
    b1b = jax.random.normal(k2[2], (Cr2,), dtype=jnp.float32) * 0.1
    w2b = jax.random.normal(k2[3], (C2, Cr2), dtype=jnp.float32) * 0.1
    b2b = jax.random.normal(k2[4], (C2,), dtype=jnp.float32) * 0.1
    ref2 = se_reference(x2, w1b, b1b, w2b, b2b)
    se_fn_donate = jax.jit(functools.partial(se_module, donate_input=True))
    out2 = jax.block_until_ready(se_fn_donate(x2, w1b, b1b, w2b, b2b))
    assert out2.shape == (N2, C2, H2, W2)
    assert jnp.allclose(out2, ref2, atol=1e-4, rtol=1e-4), (
        float(jnp.max(jnp.abs(out2 - ref2))))

    print("KERNEL_OK")
</pallas_src>

<mosaic_0001>
module attributes {stable_mosaic.version = 11 : i64} {
  func.func @se_kernel(%arg0: i32, %arg1: memref<1x8x256xf32, #tpu.memory_space<vmem>>, %arg2: memref<8x2xf32, #tpu.memory_space<vmem>>, %arg3: memref<1x2xf32, #tpu.memory_space<vmem>>, %arg4: memref<2x8xf32, #tpu.memory_space<vmem>>, %arg5: memref<1x8xf32, #tpu.memory_space<vmem>>, %arg6: memref<1x8x256xf32, #tpu.memory_space<vmem>>) attributes {dimension_semantics = [#tpu.dimension_semantics<parallel>], iteration_bounds = array<i64: 2>, scalar_prefetch = 0 : i64, scratch_operands = 0 : i64, tpu.core_type = #tpu.core_type<tc>, window_params = [{transform_indices = @transform_0, window_bounds = array<i64: 1, 8, 256>}, {pipeline_mode = #tpu.pipeline_mode<synchronous>, transform_indices = @transform_1, window_bounds = array<i64: 8, 2>}, {pipeline_mode = #tpu.pipeline_mode<synchronous>, transform_indices = @transform_2, window_bounds = array<i64: 1, 2>}, {pipeline_mode = #tpu.pipeline_mode<synchronous>, transform_indices = @transform_3, window_bounds = array<i64: 2, 8>}, {pipeline_mode = #tpu.pipeline_mode<synchronous>, transform_indices = @transform_4, window_bounds = array<i64: 1, 8>}, {transform_indices = @transform_5, window_bounds = array<i64: 1, 8, 256>}]} {
    %c0 = arith.constant 0 : index
    %c0_0 = arith.constant 0 : index
    %c0_1 = arith.constant 0 : index
    %0 = vector.load %arg1[%c0, %c0_0, %c0_1] : memref<1x8x256xf32, #tpu.memory_space<vmem>>, vector<1x8x256xf32>
    %cst = arith.constant dense<0.000000e+00> : vector<1x8xf32>
    %1 = vector.multi_reduction <add>, %0, %cst [2] : vector<1x8x256xf32> to vector<1x8xf32>
    %cst_2 = arith.constant 3.906250e-03 : f32
    %2 = vector.broadcast %cst_2 : f32 to vector<1x8xf32>
    %3 = arith.mulf %1, %2 : vector<1x8xf32>
    %c0_3 = arith.constant 0 : index
    %c0_4 = arith.constant 0 : index
    %4 = vector.load %arg2[%c0_3, %c0_4] : memref<8x2xf32, #tpu.memory_space<vmem>>, vector<8x2xf32>
    %cst_5 = arith.constant dense<0.000000e+00> : vector<1x2xf32>
    %5 = tpu.matmul %3, %4, %cst_5 {dimension_numbers = #tpu.dot_dimension_numbers<[1], [0], [0], [1], [0, 0, 1, 1], [], []>} : vector<1x8xf32>, vector<8x2xf32>, vector<1x2xf32> -> vector<1x2xf32>
    %c0_6 = arith.constant 0 : index
    %c0_7 = arith.constant 0 : index
    %6 = vector.load %arg3[%c0_6, %c0_7] : memref<1x2xf32, #tpu.memory_space<vmem>>, vector<1x2xf32>
    %7 = arith.addf %5, %6 : vector<1x2xf32>
    %cst_8 = arith.constant 0.000000e+00 : f32
    %8 = vector.broadcast %cst_8 : f32 to vector<1x2xf32>
    %9 = arith.maximumf %7, %8 : vector<1x2xf32>
    %c0_9 = arith.constant 0 : index
    %c0_10 = arith.constant 0 : index
    %10 = vector.load %arg4[%c0_9, %c0_10] : memref<2x8xf32, #tpu.memory_space<vmem>>, vector<2x8xf32>
    %cst_11 = arith.constant dense<0.000000e+00> : vector<1x8xf32>
    %11 = tpu.matmul %9, %10, %cst_11 {dimension_numbers = #tpu.dot_dimension_numbers<[1], [0], [0], [1], [0, 0, 1, 1], [], []>} : vector<1x2xf32>, vector<2x8xf32>, vector<1x8xf32> -> vector<1x8xf32>
    %c0_12 = arith.constant 0 : index
    %c0_13 = arith.constant 0 : index
    %12 = vector.load %arg5[%c0_12, %c0_13] : memref<1x8xf32, #tpu.memory_space<vmem>>, vector<1x8xf32>
    %13 = arith.addf %11, %12 : vector<1x8xf32>
    %cst_14 = arith.constant 3.000000e+00 : f32
    %14 = vector.broadcast %cst_14 : f32 to vector<1x8xf32>
    %15 = arith.addf %13, %14 : vector<1x8xf32>
    %cst_15 = arith.constant 0.000000e+00 : f32
    %cst_16 = arith.constant 6.000000e+00 : f32
    %16 = vector.broadcast %cst_15 : f32 to vector<1x8xf32>
    %17 = arith.maximumf %16, %15 : vector<1x8xf32>
    %18 = vector.broadcast %cst_16 : f32 to vector<1x8xf32>
    %19 = arith.minimumf %18, %17 : vector<1x8xf32>
    %cst_17 = arith.constant 0.166666672 : f32
    %20 = vector.broadcast %cst_17 : f32 to vector<1x8xf32>
    %21 = arith.mulf %19, %20 : vector<1x8xf32>
    %22 = vector.shape_cast %21 : vector<1x8xf32> to vector<1x8x1xf32>
    %c0_18 = arith.constant 0 : index
    %c0_19 = arith.constant 0 : index
    %c0_20 = arith.constant 0 : index
    %23 = vector.load %arg1[%c0_18, %c0_19, %c0_20] : memref<1x8x256xf32, #tpu.memory_space<vmem>>, vector<1x8x256xf32>
    %24 = vector.broadcast %22 : vector<1x8x1xf32> to vector<1x8x256xf32>
    %25 = arith.mulf %23, %24 : vector<1x8x256xf32>
    %c0_21 = arith.constant 0 : index
    %c0_22 = arith.constant 0 : index
    %c0_23 = arith.constant 0 : index
    %26 = vector.load %arg6[%c0_21, %c0_22, %c0_23] : memref<1x8x256xf32, #tpu.memory_space<vmem>>, vector<1x8x256xf32>
    tpu.vector_store %arg6[%c0_21, %c0_22, %c0_23], %25 {strides = array<i32>} : memref<1x8x256xf32, #tpu.memory_space<vmem>>, vector<1x8x256xf32>,
    return
  }
  func.func @transform_0(%arg0: i32) -> (i32, i32, i32) {
    %c0_i32 = arith.constant 0 : i32
    %c0_i32_0 = arith.constant 0 : i32
    %c0_i32_1 = arith.constant 0 : i32
    return %arg0, %c0_i32, %c0_i32_0 : i32, i32, i32
  }
  func.func @transform_1(%arg0: i32) -> (i32, i32) {
    %c0_i32 = arith.constant 0 : i32
    %c0_i32_0 = arith.constant 0 : i32
    %c0_i32_1 = arith.constant 0 : i32
    return %c0_i32, %c0_i32_0 : i32, i32
  }
  func.func @transform_2(%arg0: i32) -> (i32, i32) {
    %c0_i32 = arith.constant 0 : i32
    %c0_i32_0 = arith.constant 0 : i32
    %c0_i32_1 = arith.constant 0 : i32
    return %c0_i32, %c0_i32_0 : i32, i32
  }
  func.func @transform_3(%arg0: i32) -> (i32, i32) {
    %c0_i32 = arith.constant 0 : i32
    %c0_i32_0 = arith.constant 0 : i32
    %c0_i32_1 = arith.constant 0 : i32
    return %c0_i32, %c0_i32_0 : i32, i32
  }
  func.func @transform_4(%arg0: i32) -> (i32, i32) {
    %c0_i32 = arith.constant 0 : i32
    %c0_i32_0 = arith.constant 0 : i32
    %c0_i32_1 = arith.constant 0 : i32
    return %c0_i32, %c0_i32_0 : i32, i32
  }
  func.func @transform_5(%arg0: i32) -> (i32, i32, i32) {
    %c0_i32 = arith.constant 0 : i32
    %c0_i32_0 = arith.constant 0 : i32
    %c0_i32_1 = arith.constant 0 : i32
    return %arg0, %c0_i32, %c0_i32_0 : i32, i32, i32
  }
}

</mosaic_0001>

<bundles_post_ra>
// kernel: se_module.1
= control target key start
LH: loop header
LB: loop body
LE: loop exit
PB: predicated region body
PF: predicated region fallthrough
CT: control target
= control target key end

     0   :  { %s544_s18 = smov 0   ;;  %s580_s0 = inlined_call_operand.vmem [shape: f32[2,8,256], index: 0, kind: input, shape index: {}]   ;;  %s581_s1 = inlined_call_operand.vmem [shape: f32[8,2], index: 1, kind: input, shape index: {}]   ;;  %s582_s2 = inlined_call_operand.vmem [shape: f32[1,2], index: 2, kind: input, shape index: {}]   ;;  %s583_s3 = inlined_call_operand.vmem [shape: f32[2,8], index: 3, kind: input, shape index: {}]   ;;  %s584_s4 = inlined_call_operand.vmem [shape: f32[1,8], index: 4, kind: input, shape index: {}]   ;;  %s585_s5 = inlined_call_operand.vmem [shape: f32[2,8,256], index: 5, kind: output, shape index: {}]  }
   0x1 LB: > { %s464_s19 = sadd.s32 4294967295, %s510_s18   ;;  %p468_p0 = scmp.ge.s32.totalorder %s510_s18, 1  ;;  %s510_s18 = sphi %s544_s18, %s15_s18  }
   0x2   : > { %p187_p1 = scmp.lt.s32.totalorder %s510_s18, 3 }
   0x4   : > { %p188_p2 = pnand %p468_p0, %p187_p1 }
   0x5   : > { %p215_p3 = scmp.lt.s32.totalorder (!%p188_p2), %s464_s19, 1 }
   0x6   : > { %191 = sbr.rel (%p188_p2) target bundleno = 679 (0x2a7), region = 40 }
   0xb   : > { %s587_s19 = smov (!%p215_p3, %s464_s19), 1  ;;  %v512_v3 = vmov 0.0   ;;  %v231_v4 = vld [vmem:[%s581_s1] sm:$0xff]  ;;  %vm513_vm0 = vmmov 0   ;;  %v234_v5 = vlaneseq  ;;  %vm240_vm1 = vcmask 64512  }
   0xc   : > { %s478_s20 = sshll.u32 %s587_s19, 4  ;;  %484 = vmatprep.subr.mxu0 %v512_v3  ;;  %489 = vmatprep.subr.mxu1 %v512_v3  ;;  %v314_v12 = vld [vmem:[%s583_s3] sm:$0x3]  ;;  %vm320_vm2 = vcmask 1041408   ;;  %vm316_vm3 = vcmask 15360  }
   0xd   : > { %s219_s23 = scalar_lea.vmem %s580_s0, %s478_s20  ;;  %485 = vmatpush3.msra.mxu0 %v231_v4  ;;  %486 = vmatprep.mubr.msk.f32.mxu0 %vm513_vm0, %v512_v3  ;;  %v235_v6 = vand.u32 127, %v234_v5  ;;  %v237_v7 = vshrl.u32 %v234_v5, 7  ;;  %v232_v13 = vld [vmem:[%s582_s2] sm:$0x1]  ;;  %s224_s9 = scalar_lea.vmem %s585_s5, %s478_s20 }
   0xe   : > { %v225_v0 = vld [vmem:[%s219_s23] sm:$0xff]  ;;  %v226_v1 = vld [vmem:[%s219_s23 + $0x8] sm:$0xff]  ;;  %491 = vmatprep.mubr.msk.f32.mxu1 %vm513_vm0, %v512_v3  ;;  %490 = vmatpush3.msk.msra.mxu1 %vm320_vm2, %v314_v12 }
   0xf   : > { %v227_v2 = vadd.f32 %v226_v1, %v225_v0  ;;  %v238_v8 = vsub.s32 %v235_v6, %v237_v7  ;;  %v315_v18 = vld [vmem:[%s584_s4] sm:$0x1]  ;;  %v400_v25 = vsub.s32 0, %v237_v7 }
  0x11   : > { %228 = vadd.xlane.f32.xlu0 %v227_v2 }
  0x9a   : > { %v229_v9 = vpop.xlane.xlu0 %228 }
  0x9b   : > { %v230_v10 = vmul.f32 0.00390625, %v229_v9 }
  0x9d   : > { %v239_v11 = vrot.slane %v230_v10, %v238_v8 }
  0x9f   : > { %487 = vmatmul.mubr.msk.f32.vlgmr.msra.gmra.mxu0 %vm240_vm1, %v239_v11 }
 0x15f   : > { %v309_v14 = vpop.f32.mrf.mxu0 }
 0x160   : > { %v310_v15 = vadd.f32 %v309_v14, %v232_v13 }
 0x161   : > { %v488_v16 = vpop.f32.mrf.mxu0 }
 0x162   : > { %v313_v17 = vmax.f32 %v310_v15, 0.0 }
 0x164   : > { %492 = vmatmul.mubr.msk.f32.vlgmr.msra.gmra.mxu1 %vm316_vm3, %v313_v17 }
 0x224   : > { %v390_v19 = vpop.f32.mrf.mxu1 }
 0x225   : > { %v391_v20 = vadd.f32 %v390_v19, %v315_v18 }
 0x226   : > { %v493_v21 = vpop.f32.mrf.mxu1 }
 0x227   : > { %v394_v22 = vadd.f32 3.0, %v391_v20 }
 0x229   : > { %v395_v23 = vmax.f32 %v394_v22, 0.0 }
 0x22b   : > { %v396_v24 = vmin.f32 %v395_v23, 6.0 }
 0x22d   : > { %v397_v26 = vmul.f32 0.16666667, %v396_v24 }
 0x22f   : > { %v401_v27 = vrot.slane %v397_v26, %v400_v25 }
 0x231   : > { %403 = vbcast.lane.b32.xlu0 %v401_v27, 256 }
 0x2a3   : > { %v404_v28 = vpop.permute.xlu0 %403 }
 0x2a4   : > { %v405_v29 = vmul.f32 %v404_v28, %v225_v0  ;;  %v406_v30 = vmul.f32 %v404_v28, %v226_v1 }
 0x2a6   : > { %407 = vst [vmem:[%s224_s9] sm:$0xff] %v405_v29  ;;  %408 = vst [vmem:[%s224_s9 + $0x8] sm:$0xff] %v406_v30 }
 0x2a7 PF: > { %s15_s18 = sadd.s32 1, %s510_s18  }
 0x2a8   : > { %p12_p4 = scmp.ge.s32.totalorder %s15_s18, 4  }
 0x2aa   :  { %14 = sbr.rel (!%p12_p4) target bundleno = 1 (0x1), region = 70 }

</bundles_post_ra>
